<compile_context>
chip_gen: v6e
topology: v6e:2x2x1
jax: 0.10.0
libtpu: 0.0.40
codegen_flags: <defaults>
</compile_context>

<pallas_src>
import functools

import numpy as np

import jax
import jax.numpy as jnp
from jax.experimental import pallas as pl
from jax.experimental.pallas import tpu as pltpu


def _round_up(x, m):
    return ((x + m - 1) // m) * m


@functools.lru_cache(maxsize=None)
def _build_relative_position_index(window_size):
    """Replicates the PyTorch __init__ buffer construction (static, numpy)."""
    wh, ww = window_size
    num_relative_distance = (2 * wh - 1) * (2 * ww - 1) + 3

    coords_h = np.arange(wh)
    coords_w = np.arange(ww)
    coords = np.stack(np.meshgrid(coords_h, coords_w, indexing="ij"))  # (2, Wh, Ww)
    coords_flatten = coords.reshape(2, -1)                              # (2, M)
    relative_coords = coords_flatten[:, :, None] - coords_flatten[:, None, :]
    relative_coords = relative_coords.transpose(1, 2, 0).copy()         # (M, M, 2)
    relative_coords[:, :, 0] += wh - 1
    relative_coords[:, :, 1] += ww - 1
    relative_coords[:, :, 0] *= 2 * ww - 1

    m = wh * ww
    rel_pos_index = np.zeros((m + 1, m + 1), dtype=np.int32)
    rel_pos_index[1:, 1:] = relative_coords.sum(-1)
    rel_pos_index[0, :] = num_relative_distance - 3
    rel_pos_index[:, 0] = num_relative_distance - 2
    rel_pos_index[0, 0] = num_relative_distance - 1
    return rel_pos_index, num_relative_distance


@functools.lru_cache(maxsize=None)
def _padded_index_row(window_size, nn_pad):
    """(1, nn_pad) int32 flattened index, padded with -1 (selects nothing)."""
    rel_idx, _ = _build_relative_position_index(window_size)
    idx = np.full((1, nn_pad), -1, dtype=np.int32)
    idx[0, : rel_idx.size] = rel_idx.reshape(-1)
    return idx


def _rel_pos_bias_kernel(table_t_ref, idx_ref, out_ref):
    """Gather via in-kernel one-hot + MXU dot.

    table_t_ref: (H_pad, D_pad)   f32  transposed, zero-padded bias table (resident)
    idx_ref:     (1, tile_nn)     i32  flattened relative_position_index tile
    out_ref:     (H_pad, tile_nn) f32  gathered bias, head-major / pair-minor
    """
    d_pad = table_t_ref.shape[1]
    tile_nn = idx_ref.shape[1]
    idx = idx_ref[...]                                                  # (1, tile_nn)
    rows = jax.lax.broadcasted_iota(jnp.int32, (d_pad, tile_nn), 0)     # (D_pad, tile_nn)
    onehot = (rows == idx).astype(jnp.float32)                          # padding idx=-1 -> all zero
    out_ref[...] = jnp.dot(
        table_t_ref[...], onehot, preferred_element_type=jnp.float32
    )


@functools.partial(jax.jit, static_argnames=("window_size", "tile_nn"))
def _relative_position_bias_impl(table, *, window_size, tile_nn):
    wh, ww = window_size
    n = wh * ww + 1
    nn = n * n
    d, num_heads = table.shape

    rel_idx, num_rel = _build_relative_position_index(window_size)
    assert num_rel == d, "table rows must equal num_relative_distance"
    del rel_idx

    # --- static layout / padding choices (all (8,128)-aligned) ---------------
    nn128 = _round_up(nn, 128)
    tile_nn = _round_up(max(int(tile_nn), 1), 128)   # force lane-aligned tile
    tile_nn = min(tile_nn, nn128)                    # small windows: single step
    nn_pad = _round_up(nn, tile_nn)
    h_pad = _round_up(num_heads, 8)
    d_pad = _round_up(d, 128)

    # Tiny int32 index stream instead of a dense f32 one-hot in HBM.
    idx_row = jnp.asarray(_padded_index_row(window_size, nn_pad))   # (1, nn_pad)

    # Transposed, zero-padded table (H_pad, D_pad), kept f32 for exact gather.
    table_t = jnp.zeros((h_pad, d_pad), jnp.float32)
    table_t = table_t.at[:num_heads, :d].set(table.T.astype(jnp.float32))

    grid = (nn_pad // tile_nn,)
    gathered = pl.pallas_call(
        _rel_pos_bias_kernel,
        out_shape=jax.ShapeDtypeStruct((h_pad, nn_pad), jnp.float32),
        grid_spec=pltpu.PrefetchScalarGridSpec(
            num_scalar_prefetch=0,
            grid=grid,
            in_specs=[
                pl.BlockSpec((h_pad, d_pad), lambda i: (0, 0)),   # resident table
                pl.BlockSpec((1, tile_nn), lambda i: (0, i)),     # streamed int32 index
            ],
            out_specs=pl.BlockSpec((h_pad, tile_nn), lambda i: (0, i)),
        ),
        compiler_params=pltpu.CompilerParams(
            dimension_semantics=("parallel",),
            vmem_limit_bytes=32 * 1024 * 1024,
        ),
    )(table_t, idx_row)

    # (H_pad, NN_pad) -> (H, NN) -> (H, N, N): slice + free reshape, no transpose.
    return gathered[:num_heads, :nn].reshape(num_heads, n, n)


def relative_position_bias(table, window_size, *, tile_nn=2048):
    """Pallas-backed forward: returns (num_heads, N, N), N = Wh*Ww + 1."""
    return _relative_position_bias_impl(
        table, window_size=tuple(int(w) for w in window_size), tile_nn=int(tile_nn)
    )


if __name__ == "__main__":
    window_size = (4, 4)   # small spatial window -> N = 17, NN = 289
    num_heads = 4

    rel_idx, num_relative_distance = _build_relative_position_index(window_size)

    # nn.Parameter is zeros in the module; use a small random table so the
    # gather is actually exercised.
    key = jax.random.PRNGKey(0)
    table = jax.random.normal(
        key, (num_relative_distance, num_heads), dtype=jnp.float32) * 0.02

    # pure-JAX reference: table[index.view(-1)].view(N, N, H).permute(2, 0, 1)
    n = window_size[0] * window_size[1] + 1
    ref = table[jnp.asarray(rel_idx.reshape(-1))].reshape(
        n, n, num_heads).transpose(2, 0, 1)

    # Single-tile path (default large tile clamps to one 384-wide step).
    out = relative_position_bias(table, window_size)
    out = jax.block_until_ready(out)
    assert out.shape == (num_heads, n, n), out.shape
    assert jnp.allclose(out, ref, atol=1e-6), "mismatch vs reference gather"

    # Multi-tile grid path (exercises the streamed index tiling).
    out_tiled = relative_position_bias(table, window_size, tile_nn=128)
    out_tiled = jax.block_until_ready(out_tiled)
    assert jnp.allclose(out_tiled, ref, atol=1e-6), "mismatch (tiled) vs reference"

    print("KERNEL_OK")
</pallas_src>

<mosaic_0001>
module attributes {stable_mosaic.version = 11 : i64} {
  func.func @_rel_pos_bias_kernel(%arg0: i32, %arg1: memref<8x128xf32, #tpu.memory_space<vmem>>, %arg2: memref<1x384xi32, #tpu.memory_space<vmem>>, %arg3: memref<8x384xf32, #tpu.memory_space<vmem>>) attributes {dimension_semantics = [#tpu.dimension_semantics<parallel>], iteration_bounds = array<i64: 1>, scalar_prefetch = 0 : i64, scratch_operands = 0 : i64, tpu.core_type = #tpu.core_type<tc>, window_params = [{pipeline_mode = #tpu.pipeline_mode<synchronous>, transform_indices = @transform_0, window_bounds = array<i64: 8, 128>}, {transform_indices = @transform_1, window_bounds = array<i64: 1, 384>}, {transform_indices = @transform_2, window_bounds = array<i64: 8, 384>}]} {
    %c0 = arith.constant 0 : index
    %c0_0 = arith.constant 0 : index
    %0 = vector.load %arg2[%c0, %c0_0] : memref<1x384xi32, #tpu.memory_space<vmem>>, vector<1x384xi32>
    %1 = tpu.iota {dimensions = array<i32: 0>} : vector<128x384xi32>
    %2 = vector.broadcast %0 : vector<1x384xi32> to vector<128x384xi32>
    %3 = arith.cmpi eq, %1, %2 : vector<128x384xi32>
    %4 = arith.extui %3 : vector<128x384xi1> to vector<128x384xi32>
    %5 = arith.sitofp %4 : vector<128x384xi32> to vector<128x384xf32>
    %c0_1 = arith.constant 0 : index
    %c0_2 = arith.constant 0 : index
    %6 = vector.load %arg1[%c0_1, %c0_2] : memref<8x128xf32, #tpu.memory_space<vmem>>, vector<8x128xf32>
    %cst = arith.constant dense<0.000000e+00> : vector<8x384xf32>
    %7 = tpu.matmul %6, %5, %cst {dimension_numbers = #tpu.dot_dimension_numbers<[1], [0], [0], [1], [0, 0, 1, 1], [], []>} : vector<8x128xf32>, vector<128x384xf32>, vector<8x384xf32> -> vector<8x384xf32>
    %c0_3 = arith.constant 0 : index
    %c0_4 = arith.constant 0 : index
    %8 = vector.load %arg3[%c0_3, %c0_4] : memref<8x384xf32, #tpu.memory_space<vmem>>, vector<8x384xf32>
    tpu.vector_store %arg3[%c0_3, %c0_4], %7 {strides = array<i32>} : memref<8x384xf32, #tpu.memory_space<vmem>>, vector<8x384xf32>,
    return
  }
  func.func @transform_0(%arg0: i32) -> (i32, i32) {
    %c0_i32 = arith.constant 0 : i32
    %c0_i32_0 = arith.constant 0 : i32
    %c0_i32_1 = arith.constant 0 : i32
    return %c0_i32, %c0_i32_0 : i32, i32
  }
  func.func @transform_1(%arg0: i32) -> (i32, i32) {
    %c0_i32 = arith.constant 0 : i32
    %c0_i32_0 = arith.constant 0 : i32
    return %c0_i32, %arg0 : i32, i32
  }
  func.func @transform_2(%arg0: i32) -> (i32, i32) {
    %c0_i32 = arith.constant 0 : i32
    %c0_i32_0 = arith.constant 0 : i32
    return %c0_i32, %arg0 : i32, i32
  }
}

</mosaic_0001>

<bundles_post_ra>
// kernel: _relative_position_bias_impl.1
= control target key start
LH: loop header
LB: loop body
LE: loop exit
PB: predicated region body
PF: predicated region fallthrough
CT: control target
= control target key end

     0   :  { %v12_v0 = vlaneseq  ;;  %v485_v1 = vmov 0.0   ;;  %vm486_vm0 = vmmov 0   ;;  %v487_v14 = vmov 1.0   ;;  %s661_s1 = inlined_call_operand.vmem [shape: s32[1,384], index: 1, kind: input, shape index: {}]   ;;  %s662_s0 = inlined_call_operand.vmem [shape: f32[8,128], index: 0, kind: input, shape index: {}]   ;;  %s663_s2 = inlined_call_operand.vmem [shape: f32[8,384], index: 2, kind: output, shape index: {}]  }
   0x1   :  { %447 = vmatprep.subr.mxu1 %v485_v1  ;;  %479 = vmatprep.mubr.msk.f32.mxu1 %vm486_vm0, %v485_v1  ;;  %v11_v3 = vld [vmem:[%s661_s1] sm:$0x7] }
   0x2   :  { %v505_v2 = vshrl.u32 %v12_v0, 7  ;;  %250 = vmatprep.mubr.f32.mxu0 %v485_v1  ;;  %v185_v26 = vld [vmem:[%s662_s0] sm:$0xff] }
   0x4   :  { %v28_v4 = vadd.s32 120, %v505_v2  ;;  %v35_v5 = vsub.s32 1, %v505_v2  ;;  %v39_v6 = vsub.s32 2, %v505_v2  ;;  %v31_v7 = vsub.s32 0, %v505_v2 }
   0x5   :  { %v27_v8 = vadd.s32 112, %v505_v2  ;;  %v26_v12 = vadd.s32 104, %v505_v2  ;;  %v25_v13 = vadd.s32 96, %v505_v2  ;;  %v24_v15 = vadd.s32 88, %v505_v2 }
   0x6   :  { %v516_v9 = vrot.slane %v11_v3, %v35_v5  ;;  %v518_v10 = vrot.slane %v11_v3, %v39_v6  ;;  %v520_v11 = vrot.slane %v11_v3, %v31_v7  ;;  %v23_v16 = vadd.s32 80, %v505_v2 }
   0x7   :  { %v22_v17 = vadd.s32 72, %v505_v2  ;;  %v21_v18 = vadd.s32 64, %v505_v2  ;;  %v20_v19 = vadd.s32 56, %v505_v2  ;;  %v19_v20 = vadd.s32 48, %v505_v2 }
   0x8   :  { %vm87_vm1 = vcmp.eq.s32.totalorder %v28_v4, %v516_v9  ;;  %vm88_vm2 = vcmp.eq.s32.totalorder %v28_v4, %v518_v10  ;;  %vm86_vm3 = vcmp.eq.s32.totalorder %v28_v4, %v520_v11  ;;  %vm84_vm4 = vcmp.eq.s32.totalorder %v27_v8, %v516_v9 }
   0x9   :  { %382 = vmatprep.subr.msk.mxu0 %vm87_vm1, %v487_v14  ;;  %448 = vmatpush3.msk.msra.mxu1 %vm88_vm2, %v487_v14  ;;  %vm85_vm5 = vcmp.eq.s32.totalorder %v27_v8, %v518_v10  ;;  %vm83_vm6 = vcmp.eq.s32.totalorder %v27_v8, %v520_v11  ;;  %vm81_vm7 = vcmp.eq.s32.totalorder %v26_v12, %v516_v9  ;;  %v18_v21 = vadd.s32 40, %v505_v2 }
   0xa   :  { %383 = vmatpush1.msk.msra.mxu0 %vm86_vm3, %v487_v14  ;;  %449 = vmatprep.subr.mxu1 %v485_v1  ;;  %vm82_vm8 = vcmp.eq.s32.totalorder %v26_v12, %v518_v10  ;;  %vm80_vm9 = vcmp.eq.s32.totalorder %v26_v12, %v520_v11  ;;  %vm78_vm10 = vcmp.eq.s32.totalorder %v25_v13, %v516_v9  ;;  %v17_v22 = vadd.s32 32, %v505_v2 }
   0xb   :  { %384 = vmatprep.subr.msk.mxu0 %vm84_vm4, %v487_v14  ;;  %450 = vmatpush3.msk.msra.mxu1 %vm85_vm5, %v487_v14  ;;  %vm79_vm11 = vcmp.eq.s32.totalorder %v25_v13, %v518_v10  ;;  %vm77_vm12 = vcmp.eq.s32.totalorder %v25_v13, %v520_v11  ;;  %vm75_vm13 = vcmp.eq.s32.totalorder %v24_v15, %v516_v9  ;;  %v16_v23 = vadd.s32 24, %v505_v2 }
   0xc   :  { %385 = vmatpush1.msk.msra.mxu0 %vm83_vm6, %v487_v14  ;;  %451 = vmatprep.subr.mxu1 %v485_v1  ;;  %vm76_vm14 = vcmp.eq.s32.totalorder %v24_v15, %v518_v10  ;;  %vm74_vm15 = vcmp.eq.s32.totalorder %v24_v15, %v520_v11  ;;  %vm72_vm0 = vcmp.eq.s32.totalorder %v23_v16, %v516_v9  ;;  %v15_v24 = vadd.s32 16, %v505_v2 }
   0xd   :  { %386 = vmatprep.subr.msk.mxu0 %vm81_vm7, %v487_v14  ;;  %452 = vmatpush3.msk.msra.mxu1 %vm82_vm8, %v487_v14  ;;  %vm73_vm1 = vcmp.eq.s32.totalorder %v23_v16, %v518_v10  ;;  %vm71_vm2 = vcmp.eq.s32.totalorder %v23_v16, %v520_v11  ;;  %vm69_vm3 = vcmp.eq.s32.totalorder %v22_v17, %v516_v9  ;;  %v14_v25 = vadd.s32 8, %v505_v2 }
   0xe   :  { %387 = vmatpush1.msk.msra.mxu0 %vm80_vm9, %v487_v14  ;;  %453 = vmatprep.subr.mxu1 %v485_v1  ;;  %vm70_vm4 = vcmp.eq.s32.totalorder %v22_v17, %v518_v10  ;;  %vm68_vm5 = vcmp.eq.s32.totalorder %v22_v17, %v520_v11  ;;  %vm66_vm6 = vcmp.eq.s32.totalorder %v21_v18, %v516_v9 }
   0xf   :  { %388 = vmatprep.subr.msk.mxu0 %vm78_vm10, %v487_v14  ;;  %454 = vmatpush3.msk.msra.mxu1 %vm79_vm11, %v487_v14  ;;  %vm67_vm7 = vcmp.eq.s32.totalorder %v21_v18, %v518_v10  ;;  %vm65_vm8 = vcmp.eq.s32.totalorder %v21_v18, %v520_v11  ;;  %vm63_vm9 = vcmp.eq.s32.totalorder %v20_v19, %v516_v9 }
  0x10   :  { %389 = vmatpush1.msk.msra.mxu0 %vm77_vm12, %v487_v14  ;;  %455 = vmatprep.subr.mxu1 %v485_v1  ;;  %vm64_vm10 = vcmp.eq.s32.totalorder %v20_v19, %v518_v10  ;;  %vm62_vm11 = vcmp.eq.s32.totalorder %v20_v19, %v520_v11  ;;  %vm60_vm12 = vcmp.eq.s32.totalorder %v19_v20, %v516_v9 }
  0x11   :  { %390 = vmatprep.subr.msk.mxu0 %vm75_vm13, %v487_v14  ;;  %456 = vmatpush3.msk.msra.mxu1 %vm76_vm14, %v487_v14  ;;  %vm61_vm13 = vcmp.eq.s32.totalorder %v19_v20, %v518_v10  ;;  %vm59_vm14 = vcmp.eq.s32.totalorder %v19_v20, %v520_v11 }
  0x12   :  { %391 = vmatpush1.msk.msra.mxu0 %vm74_vm15, %v487_v14  ;;  %457 = vmatprep.subr.mxu1 %v485_v1  ;;  %vm57_vm15 = vcmp.eq.s32.totalorder %v18_v21, %v516_v9 }
  0x13   :  { %392 = vmatprep.subr.msk.mxu0 %vm72_vm0, %v487_v14  ;;  %458 = vmatpush3.msk.msra.mxu1 %vm73_vm1, %v487_v14  ;;  %vm58_vm0 = vcmp.eq.s32.totalorder %v18_v21, %v518_v10  ;;  %vm56_vm1 = vcmp.eq.s32.totalorder %v18_v21, %v520_v11 }
  0x14   :  { %393 = vmatpush1.msk.msra.mxu0 %vm71_vm2, %v487_v14  ;;  %459 = vmatprep.subr.mxu1 %v485_v1  ;;  %vm54_vm2 = vcmp.eq.s32.totalorder %v17_v22, %v516_v9 }
  0x15   :  { %394 = vmatprep.subr.msk.mxu0 %vm69_vm3, %v487_v14  ;;  %460 = vmatpush3.msk.msra.mxu1 %vm70_vm4, %v487_v14  ;;  %vm55_vm3 = vcmp.eq.s32.totalorder %v17_v22, %v518_v10  ;;  %vm53_vm4 = vcmp.eq.s32.totalorder %v17_v22, %v520_v11 }
  0x16   :  { %395 = vmatpush1.msk.msra.mxu0 %vm68_vm5, %v487_v14  ;;  %461 = vmatprep.subr.mxu1 %v485_v1  ;;  %vm51_vm5 = vcmp.eq.s32.totalorder %v16_v23, %v516_v9 }
  0x17   :  { %396 = vmatprep.subr.msk.mxu0 %vm66_vm6, %v487_v14  ;;  %462 = vmatpush3.msk.msra.mxu1 %vm67_vm7, %v487_v14  ;;  %vm52_vm6 = vcmp.eq.s32.totalorder %v16_v23, %v518_v10  ;;  %vm50_vm7 = vcmp.eq.s32.totalorder %v16_v23, %v520_v11 }
  0x18   :  { %397 = vmatpush1.msk.msra.mxu0 %vm65_vm8, %v487_v14  ;;  %463 = vmatprep.subr.mxu1 %v485_v1  ;;  %vm48_vm8 = vcmp.eq.s32.totalorder %v15_v24, %v516_v9 }
  0x19   :  { %398 = vmatprep.subr.msk.mxu0 %vm63_vm9, %v487_v14  ;;  %464 = vmatpush3.msk.msra.mxu1 %vm64_vm10, %v487_v14  ;;  %vm49_vm9 = vcmp.eq.s32.totalorder %v15_v24, %v518_v10  ;;  %vm47_vm10 = vcmp.eq.s32.totalorder %v15_v24, %v520_v11 }
  0x1a   :  { %399 = vmatpush1.msk.msra.mxu0 %vm62_vm11, %v487_v14  ;;  %465 = vmatprep.subr.mxu1 %v485_v1  ;;  %vm45_vm11 = vcmp.eq.s32.totalorder %v14_v25, %v516_v9 }
  0x1b   :  { %400 = vmatprep.subr.msk.mxu0 %vm60_vm12, %v487_v14  ;;  %466 = vmatpush3.msk.msra.mxu1 %vm61_vm13, %v487_v14  ;;  %vm46_vm12 = vcmp.eq.s32.totalorder %v14_v25, %v518_v10  ;;  %vm44_vm13 = vcmp.eq.s32.totalorder %v14_v25, %v520_v11 }
  0x1c   :  { %401 = vmatpush1.msk.msra.mxu0 %vm59_vm14, %v487_v14  ;;  %467 = vmatprep.subr.mxu1 %v485_v1  ;;  %vm42_vm14 = vcmp.eq.s32.totalorder %v505_v2, %v516_v9 }
  0x1d   :  { %402 = vmatprep.subr.msk.mxu0 %vm57_vm15, %v487_v14  ;;  %468 = vmatpush3.msk.msra.mxu1 %vm58_vm0, %v487_v14  ;;  %vm43_vm15 = vcmp.eq.s32.totalorder %v505_v2, %v518_v10  ;;  %vm41_vm0 = vcmp.eq.s32.totalorder %v505_v2, %v520_v11 }
  0x1e   :  { %403 = vmatpush1.msk.msra.mxu0 %vm56_vm1, %v487_v14  ;;  %469 = vmatprep.subr.mxu1 %v485_v1 }
  0x1f   :  { %404 = vmatprep.subr.msk.mxu0 %vm54_vm2, %v487_v14  ;;  %470 = vmatpush3.msk.msra.mxu1 %vm55_vm3, %v487_v14 }
  0x20   :  { %405 = vmatpush1.msk.msra.mxu0 %vm53_vm4, %v487_v14  ;;  %471 = vmatprep.subr.mxu1 %v485_v1 }
  0x21   :  { %406 = vmatprep.subr.msk.mxu0 %vm51_vm5, %v487_v14  ;;  %472 = vmatpush3.msk.msra.mxu1 %vm52_vm6, %v487_v14 }
  0x22   :  { %407 = vmatpush1.msk.msra.mxu0 %vm50_vm7, %v487_v14  ;;  %473 = vmatprep.subr.mxu1 %v485_v1 }
  0x23   :  { %408 = vmatprep.subr.msk.mxu0 %vm48_vm8, %v487_v14  ;;  %474 = vmatpush3.msk.msra.mxu1 %vm49_vm9, %v487_v14 }
  0x24   :  { %409 = vmatpush1.msk.msra.mxu0 %vm47_vm10, %v487_v14  ;;  %475 = vmatprep.subr.mxu1 %v485_v1 }
  0x25   :  { %410 = vmatprep.subr.msk.mxu0 %vm45_vm11, %v487_v14  ;;  %476 = vmatpush3.msk.msra.mxu1 %vm46_vm12, %v487_v14 }
  0x26   :  { %411 = vmatpush1.msk.msra.mxu0 %vm44_vm13, %v487_v14  ;;  %477 = vmatprep.subr.mxu1 %v485_v1 }
  0x27   :  { %412 = vmatprep.subr.msk.mxu0 %vm42_vm14, %v487_v14  ;;  %478 = vmatpush3.msk.msra.mxu1 %vm43_vm15, %v487_v14 }
  0x28   :  { %413 = vmatpush1.msk.msra.mxu0 %vm41_vm0, %v487_v14  ;;  %480 = vmatmul.mubr.f32.vlgmr.msra.gmra.mxu1 %v185_v26 }
  0x29   :  { %251 = vmatmul.mubr.f32.vlgmr.msra.gmra.mxu0 %v185_v26 }
  0xe8   :  { %v323_v27 = vpop.f32.mrf.mxu1 }
  0xe9   :  { %329 = vst [vmem:[%s663_s2 + $0x10] sm:$0xff] %v323_v27  ;;  %v252_v28 = vpop.f32.mrf.mxu0 }
  0xea   :  { %327 = vst [vmem:[%s663_s2] sm:$0xff] %v252_v28  ;;  %v481_v29 = vpop.f32.mrf.mxu1 }
  0xeb   :  { %v254_v30 = vpop.f32.mrf.mxu0 }
  0xec   :  { %328 = vst [vmem:[%s663_s2 + $0x8] sm:$0xff] %v254_v30 }

</bundles_post_ra>
